<compile_context>
chip_gen: v6e
topology: v6e:2x2x1
jax: 0.10.0
libtpu: 0.0.40
codegen_flags: <defaults>
</compile_context>

<pallas_src>
import functools

import jax
import jax.numpy as jnp
from jax.experimental import pallas as pl
from jax.experimental.pallas import tpu as pltpu


def _cdiv(a, b):
    return -(-a // b)


def _round_up(a, b):
    return _cdiv(a, b) * b


def _device_knobs():
    """Returns (num TensorCores a 'parallel' grid axis shards over, per-buffer VMEM budget)."""
    try:
        kind = jax.devices()[0].device_kind.lower()
    except Exception:
        kind = ""
    # v7x has 2 TCs/chip; v4/v5p megacore also split parallel axes across 2 TCs.
    # v5e / v6e (and unknown backends) are single-TC -> no partials axis.
    if ("v7" in kind) or ("v4" in kind) or ("v5p" in kind):
        num_tc = 2
    else:
        num_tc = 1
    # Per-input-buffer byte budget.  2 inputs x 2 pipeline buffers x budget
    # (+ <= budget of f32 accumulator) stays inside the default scoped-VMEM
    # limit: v5e 16 MiB -> 2 MiB budget; v6e/v7x 32 MiB -> 4 MiB budget.
    if ("v6" in kind) or ("v7" in kind):
        per_buf = 4 << 20
    else:
        per_buf = 2 << 20
    return num_tc, per_buf


# ----------------------------------------------------------------------------
# Kernel: per-part sum of |(|pred|) - gt| (or |pred - gt|) over column blocks.
# Grid = (num_parts [parallel], blocks_per_part [arbitrary]).
# ----------------------------------------------------------------------------
def _recon_sum_kernel(pred_ref, gt_ref, out_ref, acc_ref, *,
                      unsigned, tile_n, n_cols, fold, needs_mask):
    c = pl.program_id(0)
    j = pl.program_id(1)

    p = pred_ref[...].astype(jnp.float32)
    g = gt_ref[...].astype(jnp.float32)
    if unsigned:
        term = jnp.abs(jnp.abs(p) - g)
    else:
        term = jnp.abs(p - g)

    if needs_mask:
        # Last (or phantom) column block: zero lanes past the valid width.
        # Pure VPU compare+select; correctness never depends on OOB block data.
        start = (c * pl.num_programs(1) + j) * tile_n
        lane = jax.lax.broadcasted_iota(jnp.int32, term.shape, 1)
        term = jnp.where(lane < (n_cols - start), term, 0.0)

    if fold > 1:
        # Collapse row groups of 8 onto an 8-sublane accumulator
        # (layout-preserving split of the second-minor dim; VALU-only adds).
        term = term.reshape(fold, 8, tile_n).sum(axis=0)

    @pl.when(j == 0)
    def _():
        acc_ref[...] = term            # merged zero-init + first accumulate

    @pl.when(j > 0)
    def _():
        acc_ref[...] += term           # pure VPU per-step accumulation

    @pl.when(j == pl.num_programs(1) - 1)
    def _():
        # One XLU reduce + one lane-dense block write per part.
        s = jnp.sum(acc_ref[...])
        out_ref[...] = jnp.full((8, 128), s, dtype=jnp.float32)


def _recon_sum(pred2d, gt2d, *, unsigned, max_tile_n=None):
    rows, n_cols = gt2d.shape
    num_tc, per_buf = _device_knobs()

    in_itemsize = max(pred2d.dtype.itemsize, gt2d.dtype.itemsize)
    rows_pad = max(8, _round_up(rows, 8))           # VMEM sublane padding

    # dtype-aware, byte-budgeted lane tile (multiple of 128).
    tile_n = max(128, (per_buf // (rows_pad * in_itemsize)) // 128 * 128)
    if max_tile_n is not None:
        tile_n = min(tile_n, max(128, (max_tile_n // 128) * 128))

    if tile_n >= n_cols:
        # Single block covering the full (possibly non-128-aligned) width:
        # block dim equals the array dim, so no masking / padding needed.
        tile_n = n_cols
        num_blocks = 1
    else:
        num_blocks = _cdiv(n_cols, tile_n)
        # Keep >= 2 blocks per TensorCore so each core's pipeline can
        # double-buffer; shrink the tile before shrinking the parallel axis.
        while num_tc > 1 and num_blocks < 2 * num_tc and tile_n > 512:
            tile_n = max(512, (tile_n // 2) // 128 * 128)
            num_blocks = _cdiv(n_cols, tile_n)

    num_parts = num_tc if num_blocks >= num_tc else 1
    per_part = _cdiv(num_blocks, num_parts)
    needs_mask = (num_parts * per_part * tile_n) != n_cols

    if num_parts * per_part > num_blocks:
        # Phantom iterations in the last part: clamp to the last real block
        # (its contribution is fully masked to zero in-kernel).
        last = num_blocks - 1

        def in_map(c, j):
            return (0, jnp.minimum(c * per_part + j, last))
    else:
        def in_map(c, j):
            return (0, c * per_part + j)

    fold = rows // 8 if (rows % 8 == 0 and rows > 8) else 1
    acc_rows = 8 if fold > 1 else rows

    kernel = functools.partial(
        _recon_sum_kernel, unsigned=unsigned, tile_n=tile_n, n_cols=n_cols,
        fold=fold, needs_mask=needs_mask)

    total = rows * n_cols
    cost = pl.CostEstimate(
        flops=(4 if unsigned else 3) * total,
        transcendentals=0,
        bytes_accessed=total * (pred2d.dtype.itemsize + gt2d.dtype.itemsize)
        + num_parts * 8 * 128 * 4)

    partials = pl.pallas_call(
        kernel,
        out_shape=jax.ShapeDtypeStruct((num_parts * 8, 128), jnp.float32),
        grid_spec=pltpu.PrefetchScalarGridSpec(
            num_scalar_prefetch=0,
            grid=(num_parts, per_part),
            in_specs=[
                pl.BlockSpec((rows, tile_n), in_map),
                pl.BlockSpec((rows, tile_n), in_map),
            ],
            out_specs=pl.BlockSpec((8, 128), lambda c, j: (c, 0)),
            scratch_shapes=[pltpu.VMEM((acc_rows, tile_n), jnp.float32)],
        ),
        compiler_params=pltpu.CompilerParams(
            dimension_semantics=("parallel", "arbitrary")),
        cost_estimate=cost,
    )(pred2d, gt2d)

    # Every element of part c's (8,128) block holds the same partial sum.
    return jnp.sum(partials[0::8, 0])


# ----------------------------------------------------------------------------
# Wrapper reproducing SALLoss.forward
# ----------------------------------------------------------------------------
def sal_loss(
    manifold_pnts_pred,      # unused by forward, kept for signature parity
    nonmanifold_pnts_pred,   # [B, N, 1] (or [B, N])
    nonmanifold_gt,          # [B, N]
    *,
    unsigned=True,
    weight=None,             # unused by forward
    latent_reg=None,         # optional [B, Z]
    max_tile_n=None,         # testing hook: cap on the lane tile
):
    del manifold_pnts_pred, weight

    pred = nonmanifold_pnts_pred
    # torch .squeeze(): drop the trailing unit dim explicitly (free, and no
    # B == 1 shape bug of a blanket squeeze), then match gt's shape exactly.
    if pred.ndim == nonmanifold_gt.ndim + 1 and pred.shape[-1] == 1:
        pred = pred[..., 0]
    assert pred.size == nonmanifold_gt.size, (pred.shape, nonmanifold_gt.shape)
    pred = pred.reshape(nonmanifold_gt.shape)
    gt = nonmanifold_gt

    # Natural contiguous [rows, N] view -- free reshape, no zero padding.
    n_cols = gt.shape[-1]
    rows = gt.size // n_cols
    pred2d = pred.reshape(rows, n_cols)
    gt2d = gt.reshape(rows, n_cols)

    recon_sum = _recon_sum(pred2d, gt2d, unsigned=unsigned,
                           max_tile_n=max_tile_n)
    recon_mean = recon_sum / jnp.float32(gt.size)

    if latent_reg is not None:
        # Tiny [B, Z] mean: plain jnp, fused by XLA (no extra kernel launch).
        reg_mean = jnp.mean(latent_reg.astype(jnp.float32))
        loss = recon_mean + reg_mean
        reg_term = reg_mean                      # .detach() is a fwd no-op
    else:
        loss = recon_mean
        reg_term = jnp.float32(0.0)              # torch.tensor([0.0]).mean()

    return {"loss": loss, "recon_term": recon_mean, "reg_term": reg_term}


if __name__ == "__main__":
    key = jax.random.PRNGKey(0)
    k1, k2, k3, k4, k5, k6 = jax.random.split(key, 6)

    # --- case 1: unsigned=True with latent regularization (B=2, N=300) ------
    B, N, Z = 2, 300, 32   # N deliberately NOT a multiple of 128
    manifold_pnts_pred = jax.random.normal(k1, (B, 128), jnp.float32)
    nonmanifold_pnts_pred = jax.random.normal(k2, (B, N, 1), jnp.float32)
    nonmanifold_gt = jnp.abs(jax.random.normal(k3, (B, N), jnp.float32))
    latent_reg = jax.random.normal(k4, (B, Z), jnp.float32) ** 2

    out = sal_loss(manifold_pnts_pred, nonmanifold_pnts_pred, nonmanifold_gt,
                   unsigned=True, latent_reg=latent_reg)
    jax.block_until_ready(out["loss"])

    pred_sq = nonmanifold_pnts_pred[..., 0]
    ref_recon = jnp.mean(jnp.abs(jnp.abs(pred_sq) - nonmanifold_gt))
    ref_reg = jnp.mean(latent_reg)
    assert jnp.allclose(out["recon_term"], ref_recon, rtol=1e-5, atol=1e-6)
    assert jnp.allclose(out["reg_term"], ref_reg, rtol=1e-5, atol=1e-6)
    assert jnp.allclose(out["loss"], ref_recon + ref_reg, rtol=1e-5, atol=1e-6)

    # --- case 2: signed, no latent_reg, batch of 1 (exercises squeeze path) --
    out2 = sal_loss(manifold_pnts_pred[:1], nonmanifold_pnts_pred[:1],
                    nonmanifold_gt[:1], unsigned=False, latent_reg=None)
    jax.block_until_ready(out2["loss"])
    ref2 = jnp.mean(jnp.abs(nonmanifold_pnts_pred[:1, :, 0]
                            - nonmanifold_gt[:1]))
    assert jnp.allclose(out2["loss"], ref2, rtol=1e-5, atol=1e-6)
    assert jnp.allclose(out2["reg_term"], 0.0)

    # --- case 3: multi-block grid + in-kernel tail masking (no host pad) -----
    B3, N3 = 2, 1000
    pred3 = jax.random.normal(k5, (B3, N3, 1), jnp.float32)
    gt3 = jnp.abs(jax.random.normal(k6, (B3, N3), jnp.float32))
    out3 = sal_loss(None, pred3, gt3, unsigned=True, latent_reg=None,
                    max_tile_n=256)
    jax.block_until_ready(out3["loss"])
    ref3 = jnp.mean(jnp.abs(jnp.abs(pred3[..., 0]) - gt3))
    assert jnp.allclose(out3["loss"], ref3, rtol=1e-5, atol=1e-6)

    print("KERNEL_OK")
</pallas_src>

<mosaic_0001>
module attributes {stable_mosaic.version = 11 : i64} {
  func.func @_recon_sum_kernel(%arg0: i32, %arg1: i32, %arg2: memref<2x300xf32, #tpu.memory_space<vmem>>, %arg3: memref<2x300xf32, #tpu.memory_space<vmem>>, %arg4: memref<8x128xf32, #tpu.memory_space<vmem>>, %arg5: memref<2x300xf32, #tpu.memory_space<vmem>>) attributes {dimension_semantics = [#tpu.dimension_semantics<parallel>, #tpu.dimension_semantics<arbitrary>], iteration_bounds = array<i64: 1, 1>, scalar_prefetch = 0 : i64, scratch_operands = 1 : i64, tpu.core_type = #tpu.core_type<tc>, window_params = [{transform_indices = @transform_0, window_bounds = array<i64: 2, 300>}, {transform_indices = @transform_1, window_bounds = array<i64: 2, 300>}, {transform_indices = @transform_2, window_bounds = array<i64: 8, 128>}]} {
    %c0 = arith.constant 0 : index
    %c0_0 = arith.constant 0 : index
    %0 = vector.load %arg2[%c0, %c0_0] : memref<2x300xf32, #tpu.memory_space<vmem>>, vector<2x300xf32>
    %c0_1 = arith.constant 0 : index
    %c0_2 = arith.constant 0 : index
    %1 = vector.load %arg3[%c0_1, %c0_2] : memref<2x300xf32, #tpu.memory_space<vmem>>, vector<2x300xf32>
    %2 = math.absf %0 : vector<2x300xf32>
    %3 = arith.subf %2, %1 : vector<2x300xf32>
    %4 = math.absf %3 : vector<2x300xf32>
    %c0_i32 = arith.constant 0 : i32
    %5 = arith.cmpi eq, %arg1, %c0_i32 : i32
    %6 = arith.extui %5 : i1 to i32
    %c0_i32_3 = arith.constant 0 : i32
    %7 = arith.cmpi ne, %6, %c0_i32_3 : i32
    scf.if %7 {
      %c0_8 = arith.constant 0 : index
      %c0_9 = arith.constant 0 : index
      %14 = vector.load %arg5[%c0_8, %c0_9] : memref<2x300xf32, #tpu.memory_space<vmem>>, vector<2x300xf32>
      tpu.vector_store %arg5[%c0_8, %c0_9], %4 {strides = array<i32>} : memref<2x300xf32, #tpu.memory_space<vmem>>, vector<2x300xf32>,
    } else {
    }
    %c0_i32_4 = arith.constant 0 : i32
    %8 = arith.cmpi sgt, %arg1, %c0_i32_4 : i32
    %9 = arith.extui %8 : i1 to i32
    %c0_i32_5 = arith.constant 0 : i32
    %10 = arith.cmpi ne, %9, %c0_i32_5 : i32
    scf.if %10 {
      %c0_8 = arith.constant 0 : index
      %c0_9 = arith.constant 0 : index
      %14 = vector.load %arg5[%c0_8, %c0_9] : memref<2x300xf32, #tpu.memory_space<vmem>>, vector<2x300xf32>
      %15 = arith.addf %14, %4 : vector<2x300xf32>
      %c0_10 = arith.constant 0 : index
      %c0_11 = arith.constant 0 : index
      %16 = vector.load %arg5[%c0_10, %c0_11] : memref<2x300xf32, #tpu.memory_space<vmem>>, vector<2x300xf32>
      tpu.vector_store %arg5[%c0_10, %c0_11], %15 {strides = array<i32>} : memref<2x300xf32, #tpu.memory_space<vmem>>, vector<2x300xf32>,
    } else {
    }
    %c0_i32_6 = arith.constant 0 : i32
    %11 = arith.cmpi eq, %arg1, %c0_i32_6 : i32
    %12 = arith.extui %11 : i1 to i32
    %c0_i32_7 = arith.constant 0 : i32
    %13 = arith.cmpi ne, %12, %c0_i32_7 : i32
    scf.if %13 {
      %c0_8 = arith.constant 0 : index
      %c0_9 = arith.constant 0 : index
      %14 = vector.load %arg5[%c0_8, %c0_9] : memref<2x300xf32, #tpu.memory_space<vmem>>, vector<2x300xf32>
      %15 = vector.shape_cast %14 : vector<2x300xf32> to vector<1x2x300xf32>
      %cst = arith.constant dense<0.000000e+00> : vector<1xf32>
      %16 = vector.multi_reduction <add>, %15, %cst [1, 2] : vector<1x2x300xf32> to vector<1xf32>
      %17 = vector.shape_cast %16 : vector<1xf32> to vector<1x1x1xf32>
      %18 = vector.extract %17[0, 0, 0] : f32 from vector<1x1x1xf32>
      %19 = vector.broadcast %18 : f32 to vector<8x128xf32>
      %c0_10 = arith.constant 0 : index
      %c0_11 = arith.constant 0 : index
      %20 = vector.load %arg4[%c0_10, %c0_11] : memref<8x128xf32, #tpu.memory_space<vmem>>, vector<8x128xf32>
      tpu.vector_store %arg4[%c0_10, %c0_11], %19 {strides = array<i32>} : memref<8x128xf32, #tpu.memory_space<vmem>>, vector<8x128xf32>,
    } else {
    }
    return
  }
  func.func @transform_0(%arg0: i32, %arg1: i32) -> (i32, i32) {
    %c1_i32 = arith.constant 1 : i32
    %0 = arith.muli %arg0, %c1_i32 : i32
    %1 = arith.addi %0, %arg1 : i32
    %c0_i32 = arith.constant 0 : i32
    %c0_i32_0 = arith.constant 0 : i32
    return %c0_i32, %1 : i32, i32
  }
  func.func @transform_1(%arg0: i32, %arg1: i32) -> (i32, i32) {
    %c1_i32 = arith.constant 1 : i32
    %0 = arith.muli %arg0, %c1_i32 : i32
    %1 = arith.addi %0, %arg1 : i32
    %c0_i32 = arith.constant 0 : i32
    %c0_i32_0 = arith.constant 0 : i32
    return %c0_i32, %1 : i32, i32
  }
  func.func @transform_2(%arg0: i32, %arg1: i32) -> (i32, i32) {
    %c0_i32 = arith.constant 0 : i32
    %c0_i32_0 = arith.constant 0 : i32
    return %arg0, %c0_i32 : i32, i32
  }
}

</mosaic_0001>

<bundles_post_ra>
// kernel: tpu_custom_call.1
= control target key start
LH: loop header
LB: loop body
LE: loop exit
PB: predicated region body
PF: predicated region fallthrough
CT: control target
= control target key end

     0   :  { %7 = vsyncpa [#allocation4], 0  ;;  %s237_s0 = inlined_call_operand.hbm [shape: f32[2,300], index: 0, kind: input, shape index: {}]   ;;  %s238_s1 = inlined_call_operand.hbm [shape: f32[2,300], index: 1, kind: input, shape index: {}]   ;;  %s239_s2 = inlined_call_operand.hbm [shape: f32[8,128], index: 2, kind: output, shape index: {}]  }
   0x1   :  { %8 = vsyncpa [#allocation7], 0 }
   0x2   :  { %9 = vsyncpa [#allocation5], 0  ;;  %s206_s9 = smov [#allocation3]   ;;  %s207_s11 = smov [#allocation6]  }
   0x3   :  { %s20_s10 = sshll.u32 %s206_s9, 4  ;;  %s34_s12 = sshll.u32 %s207_s11, 4  ;;  %s21_s10 = int_to_ptr.vmem [resolvable:$true] %s20_s10  ;;  %s35_s12 = int_to_ptr.vmem [resolvable:$true] %s34_s12 }
   0x4   :  { %s148_s13 = scalar_lea.vmem %s21_s10, 96  ;;  %p153_p1 = scmp.lt.s32.totalorder %s21_s10, %s21_s10 }
   0x5   :  { %p149_p0 = scmp.ne.s32.totalorder %s21_s10, %s148_s13  ;;  %p154_p2 = scmp.lt.s32.totalorder %s148_s13, %s148_s13 }
   0x7   :  { %p155_p3 = por %p154_p2, %p153_p1 }
   0x9   :  { %p156_p4 = pnand %p155_p3, %p149_p0 }
   0xb   :  { %159 = shalt.err (!%p156_p4)
}
   0xc   :  { %23 = dma.hbm_to_vmem [thread:$0]  %s237_s0, 96, %s21_s10, [#allocation4]  }
   0xd   :  { %s168_s16 = scalar_lea.vmem %s35_s12, 96  ;;  %p173_p6 = scmp.lt.s32.totalorder %s35_s12, %s35_s12 }
   0xe   :  { %p169_p5 = scmp.ne.s32.totalorder %s35_s12, %s168_s16  ;;  %p174_p7 = scmp.lt.s32.totalorder %s168_s16, %s168_s16 }
  0x10   :  { %p175_p8 = por %p174_p7, %p173_p6 }
  0x12   :  { %p176_p9 = pnand %p175_p8, %p169_p5 }
  0x14   :  { %179 = shalt.err (!%p176_p9)
}
  0x15   :  { %37 = dma.hbm_to_vmem [thread:$0]  %s238_s1, 96, %s35_s12, [#allocation7]  }
  0x16   :  { %200 = dma.done.wait [#allocation4], 96  }
  0x17   :  { %201 = vsyncadd [#allocation4], 4294967200 }
  0x18   :  { %202 = dma.done.wait [#allocation7], 96  }
  0x19   :  { %203 = vsyncadd [#allocation7], 4294967200  ;;  %vm57_vm0 = vcmask 1041408   ;;  %vm58_vm1 = vcmask 1043458   ;;  %v48_v0 = vld [vmem:[#allocation3] sm:$0x3f]  ;;  %v84_v6 = vlaneseq }
  0x1a   :  { %v49_v1 = vld [vmem:[#allocation6] sm:$0x3f]  ;;  %v50_v2 = vand.u32 2147483647, %v48_v0  ;;  %vm59_vm2 = vmor %vm58_vm1, %vm57_vm0  ;;  %vm60_vm3 = vcmask 357380   ;;  %vm103_vm5 = vcmask 353280  }
  0x1b   :  { %v208_v4 = vmov 1983009808   ;;  %vm61_vm4 = vmor %vm60_vm3, %vm59_vm2  ;;  %v85_v9 = vshrl.u32 %v84_v6, 7  ;;  %s209_s0 = smov [#allocation8]  }
  0x1c   :  { %v51_v3 = vsub.f32 %v50_v2, %v49_v1  ;;  %v82_v5 = vunpack.c.l.s4 %v208_v4  ;;  %s123_s1 = sshll.u32 %s209_s0, 4  ;;  %s124_s1 = int_to_ptr.vmem [resolvable:$true] %s123_s1 }
  0x1d   :  { %s180_s20 = scalar_lea.vmem %s124_s1, 128  ;;  %p185_p11 = scmp.lt.s32.totalorder %s124_s1, %s124_s1 }
  0x1e   :  { %v52_v7 = vand.u32 2147483647, %v51_v3  ;;  %v83_v8 = vunpack.c.0.s8 %v82_v5  ;;  %p181_p10 = scmp.ne.s32.totalorder %s124_s1, %s180_s20  ;;  %p186_p12 = scmp.lt.s32.totalorder %s180_s20, %s180_s20 }
  0x20   :  { %62 = vst.msk [vmem:[#allocation2] sm:$0x3f] %vm61_vm4, %v52_v7  ;;  %v86_v10 = vsub.s32 %v83_v8, %v85_v9  ;;  %p187_p13 = por %p186_p12, %p185_p11 }
  0x22   :  { %p188_p0 = pnand %p187_p13, %p181_p10 }
  0x27   :  { %v78_v11 = vld [vmem:[#allocation2] sm:$0x3f] }
  0x28   :  { %v80_v12 = vcombine.high %v78_v11, %v78_v11  ;;  %v87_v13 = vrot.slane %v78_v11, %v86_v10 }
  0x2a   :  { %v94_v14 = vrot.slane %v80_v12, %v86_v10  ;;  %v95_v15 = vcombine.high %v87_v13, %v87_v13  ;;  %v100_v16 = vsel %vm57_vm0, %v87_v13, 0.0 }
  0x2c   :  { %v101_v17 = vsel %vm57_vm0, %v95_v15, 0.0  ;;  %v104_v18 = vsel %vm103_vm5, %v94_v14, 0.0 }
  0x2d   :  { %v102_v19 = vadd.f32 %v101_v17, %v100_v16 }
  0x2f   :  { %v105_v20 = vadd.f32 %v104_v18, %v102_v19 }
  0x31   :  { %106 = vadd.xlane.f32.xlu0 %v105_v20 }
  0xba   :  { %v107_v21 = vpop.xlane.xlu0 %106 }
  0xbb   :  { %v108_v22 = vrot.slane %v107_v21, 4 }
  0xbd   :  { %v109_v23 = vadd.f32 %v108_v22, %v107_v21 }
  0xbf   :  { %v110_v24 = vrot.slane %v109_v23, 2 }
  0xc1   :  { %v111_v25 = vadd.f32 %v110_v24, %v109_v23 }
  0xc3   :  { %v112_v26 = vrot.slane %v111_v25, 1 }
  0xc5   :  { %v113_v27 = vadd.f32 %v112_v26, %v111_v25 }
  0xc7   :  { %133 = vpush %v113_v27 }
  0xf8   :  { %s134_s19 = spop %133 }
  0xf9   :  { %v115_v28 = vstv %s134_s19 }
  0xfa   :  { %116 = vst [vmem:[#allocation8] sm:$0xff] %v115_v28 }
  0xfb   :  { %191 = shalt.err (!%p188_p0)
}
  0xfc   :  { %126 = dma.vmem_to_hbm [thread:$0]  %s124_s1, 128, %s239_s2, [#allocation5]  }
  0xfd   :  { %204 = dma.done.wait [#allocation5], 128  }
  0xfe   :  { %205 = vsyncadd [#allocation5], 4294967168 }
  0xff   :  { %130 = vsyncpa [#allocation4], 1 }
 0x100   :  { %131 = vsyncpa [#allocation7], 1 }
 0x101   :  { %132 = vsyncpa [#allocation5], 1 }

</bundles_post_ra>
